<compile_context>
chip_gen: v6e
topology: v6e:2x2x1
jax: 0.10.0
libtpu: 0.0.40
codegen_flags: <defaults>
</compile_context>

<pallas_src>
import functools

import jax
import jax.numpy as jnp
from jax.experimental import pallas as pl
from jax.experimental.pallas import tpu as pltpu


# ----------------------------------------------------------------------------
# Fused kernel: one grid step = one (TB, D) block of flattened images.
#   x:  (TB, D)        f32  raw flattened images (normalization folded in w1/b1)
#   w1: (D, HPAD)      bf16 (divided by per-feature std, hidden zero-padded)
#   b1: (1, HPAD)      f32  (shifted by -(mean/std) @ W1, pad lanes 0)
#   w2: (HPAD, KPAD)   bf16 (pad hidden rows 0, class dim zero-padded to 128)
#   b2: (1, KPAD)      f32  (pad class lanes = -1e30)
#   out:(TB, KPAD)     f32  packed: [prob[0:K] | top_prob @K | pred @K+1 | ~0..]
# ----------------------------------------------------------------------------
def _fused_head_kernel(x_ref, w1_ref, b1_ref, w2_ref, b2_ref, out_ref, *,
                       num_classes):
    # bf16 operands for the MXU, f32 accumulation.
    x = x_ref[...].astype(jnp.bfloat16)
    h = jnp.dot(x, w1_ref[...], preferred_element_type=jnp.float32) + b1_ref[...]
    h = jnp.maximum(h, 0.0)
    logits = jnp.dot(h.astype(jnp.bfloat16), w2_ref[...],
                     preferred_element_type=jnp.float32) + b2_ref[...]

    # Numerically stable softmax over the padded (128-wide) class dim.
    # Padded class lanes carry bias -1e30  ->  exp(logit - m) == 0 exactly.
    m = jnp.max(logits, axis=-1, keepdims=True)             # (TB, 1)
    e = jnp.exp(logits - m)                                  # (TB, KPAD)
    s = jnp.sum(e, axis=-1, keepdims=True)                   # (TB, 1)
    inv_s = pl.reciprocal(s, approx=True)                    # EUP vrcp slot
    prob = e * inv_s                                         # (TB, KPAD)

    # Top-1 directly from logits: max prob = exp(m - m)/s = 1/s.
    # First index achieving the max (matches torch.max tie-break).
    kpad = logits.shape[-1]
    lane = jax.lax.broadcasted_iota(jnp.int32, logits.shape, 1)
    cand = jnp.where(logits >= m, lane, kpad)
    pred = jnp.min(cand, axis=-1, keepdims=True).astype(jnp.float32)  # (TB, 1)
    # pred carried as f32 lane -> exact while num_classes < 2**24.

    # Pack everything into one lane-dense 128-wide slab (single unmasked store).
    packed = jnp.where(lane == num_classes, inv_s, prob)
    packed = jnp.where(lane == num_classes + 1, pred, packed)
    out_ref[...] = packed


# ----------------------------------------------------------------------------
# Host-side parameter preparation: fold normalization, pad hidden/class dims,
# cast matmul operands to bf16 (biases stay f32).
# ----------------------------------------------------------------------------
def prepare_params(mean, std, w1, b1, w2, b2, *, kpad=128, hidden_pad=None):
    """Exact algebraic rewrite:
       ((x - mean)/std) @ W1 + b1  ==  x @ (W1/std) + (b1 - (mean/std) @ W1).
       hidden_pad=256 fills the 256-wide MXU on v6e/v7x; use 128 on v5e.
       (If weight DMA ever dominates: int8 w1 on v5e/v6e, fp8 on v7x.)"""
    C = mean.shape[0]
    D, hidden = w1.shape
    hw = D // C
    mean_flat = jnp.repeat(mean.reshape(C), hw)              # (D,)
    std_flat = jnp.repeat(std.reshape(C), hw)                # (D,)

    w1_folded = w1 / std_flat[:, None]                       # (D, hidden) f32
    b1_folded = b1 - (mean_flat / std_flat)[None, :] @ w1    # (1, hidden) f32

    if hidden_pad is None:
        hidden_pad = hidden
    assert hidden_pad >= hidden and hidden_pad % 128 == 0

    k = w2.shape[1]
    assert k + 2 <= kpad, "need two spare lanes for top_prob / pred packing"

    # Pad hidden: extra lanes have bias 0 -> relu(0)=0 and zero w2 rows -> no
    # effect on logits.  Pad classes: bias -1e30 -> zero softmax weight.
    w1_pad = jnp.zeros((D, hidden_pad), jnp.float32).at[:, :hidden].set(w1_folded)
    b1_pad = jnp.zeros((1, hidden_pad), jnp.float32).at[:, :hidden].set(b1_folded)
    w2_pad = jnp.zeros((hidden_pad, kpad), jnp.float32).at[:hidden, :k].set(w2)
    b2_pad = jnp.full((1, kpad), -1e30, jnp.float32).at[:, :k].set(b2)

    return (w1_pad.astype(jnp.bfloat16),
            b1_pad,
            w2_pad.astype(jnp.bfloat16),
            b2_pad,
            k)


# ----------------------------------------------------------------------------
# Batched classifier head: grid over (N // block_b) image blocks.
# Weights stay VMEM-resident (constant block index) across all grid steps.
# ----------------------------------------------------------------------------
def classifier_head(x_flat, folded_params, *, block_b=8):
    w1p, b1p, w2p, b2p, num_classes = folded_params
    n, d = x_flat.shape
    hpad = w1p.shape[1]
    kpad = w2p.shape[1]

    # For real throughput use block_b = 128 (v5e) / 256 (v6e/v7x); 8 keeps the
    # demo tiny while staying sublane-aligned.
    n_blocks = int(pl.cdiv(n, block_b))
    n_pad = n_blocks * block_b
    if n_pad != n:
        x_flat = jnp.pad(x_flat, ((0, n_pad - n), (0, 0)))

    vmem = pltpu.MemorySpace.VMEM
    out = pl.pallas_call(
        functools.partial(_fused_head_kernel, num_classes=num_classes),
        out_shape=jax.ShapeDtypeStruct((n_pad, kpad), jnp.float32),
        grid=(n_blocks,),
        in_specs=[
            pl.BlockSpec((block_b, d), lambda i: (i, 0), memory_space=vmem),
            pl.BlockSpec((d, hpad), lambda i: (0, 0), memory_space=vmem),
            pl.BlockSpec((1, hpad), lambda i: (0, 0), memory_space=vmem),
            pl.BlockSpec((hpad, kpad), lambda i: (0, 0), memory_space=vmem),
            pl.BlockSpec((1, kpad), lambda i: (0, 0), memory_space=vmem),
        ],
        out_specs=pl.BlockSpec((block_b, kpad), lambda i: (i, 0),
                               memory_space=vmem),
        compiler_params=pltpu.CompilerParams(
            dimension_semantics=("parallel",),     # shard image blocks across TCs
            vmem_limit_bytes=32 * 1024 * 1024,     # fits v7x (64 MiB physical)
        ),
    )(x_flat, w1p, b1p, w2p, b2p)

    prob = out[:n, :num_classes]
    top_prob = out[:n, num_classes:num_classes + 1]
    top_pred = out[:n, num_classes + 1:num_classes + 2].astype(jnp.int32)
    return top_pred, top_prob, prob


# ----------------------------------------------------------------------------
# InferenceModel.forward equivalents
# ----------------------------------------------------------------------------
def inference_model(img_chw, folded_params):
    """Single image (C, H, W), matching the PyTorch forward(img) signature."""
    d = folded_params[0].shape[0]
    # pre_process: normalization folded into W1/b1; unsqueeze(0) + flatten.
    x_flat = img_chw.reshape(1, d)
    return classifier_head(x_flat, folded_params)


def inference_model_batched(imgs_nchw, folded_params, *, block_b=8):
    """Image stream (N, C, H, W) -> per-image (top_pred, top_prob, prob)."""
    n = imgs_nchw.shape[0]
    d = folded_params[0].shape[0]
    return classifier_head(imgs_nchw.reshape(n, d), folded_params,
                           block_b=block_b)


# ----------------------------------------------------------------------------
# Main
# ----------------------------------------------------------------------------
if __name__ == "__main__":
    C, H, W = 3, 16, 16
    D = C * H * W          # 768 (6 * 128 -> lane aligned)
    HIDDEN = 128
    NUM_CLASSES = 16
    N = 16                 # image stream; 2 grid steps of 8 rows each

    key = jax.random.PRNGKey(0)
    k_img, k_w1, k_b1, k_w2, k_b2 = jax.random.split(key, 5)

    # "images" in [0, 1], NCHW stream
    imgs = jax.random.uniform(k_img, (N, C, H, W), dtype=jnp.float32)

    # torchvision-style ImageNet normalization constants
    mean = jnp.array([0.485, 0.456, 0.406], dtype=jnp.float32).reshape(C, 1)
    std = jnp.array([0.229, 0.224, 0.225], dtype=jnp.float32).reshape(C, 1)

    # deterministic synthetic classifier weights (f32 masters)
    w1 = jax.random.normal(k_w1, (D, HIDDEN), dtype=jnp.float32) * 0.05
    b1 = jax.random.normal(k_b1, (1, HIDDEN), dtype=jnp.float32) * 0.01
    w2 = jax.random.normal(k_w2, (HIDDEN, NUM_CLASSES), dtype=jnp.float32) * 0.05
    b2 = jax.random.normal(k_b2, (1, NUM_CLASSES), dtype=jnp.float32) * 0.01

    # hidden_pad=256 fills the 256-wide MXU on v6e/v7x (use 128 on v5e).
    folded = prepare_params(mean, std, w1, b1, w2, b2, kpad=128, hidden_pad=256)

    # Batched / streamed path (grid over image blocks, weights VMEM-resident).
    y_top, y_prob, all_prob = inference_model_batched(imgs, folded, block_b=8)
    jax.block_until_ready((y_top, y_prob, all_prob))

    # Single-image path, matching the PyTorch module's forward(img).
    y_top1, y_prob1, all_prob1 = inference_model(imgs[0], folded)
    jax.block_until_ready((y_top1, y_prob1, all_prob1))

    # ---- f32 reference of the ORIGINAL (un-folded) pipeline ----
    x_norm = ((imgs.reshape(N, C, H * W) - mean[None]) / std[None]).reshape(N, D)
    logits_ref = jnp.maximum(x_norm @ w1 + b1, 0.0) @ w2 + b2
    prob_ref = jax.nn.softmax(logits_ref, axis=-1)

    assert all_prob.shape == (N, NUM_CLASSES)
    assert jnp.allclose(all_prob, prob_ref, atol=2e-2), "prob mismatch"

    # argmax check tolerant to bf16-induced near-tie flips vs the f32 reference
    pred_k = jnp.asarray(y_top)[:, 0]
    rows = jnp.arange(N)
    picked_ref_prob = prob_ref[rows, pred_k]
    ref_max_prob = jnp.max(prob_ref, axis=-1)
    assert bool(jnp.all(ref_max_prob - picked_ref_prob < 1e-3)), \
        "argmax mismatch beyond near-tie tolerance"
    assert jnp.allclose(y_prob[:, 0], picked_ref_prob, atol=2e-2), \
        "top prob mismatch"

    # single-image path must agree with row 0 of the batched path
    assert int(y_top1[0, 0]) == int(y_top[0, 0]), "single vs batched pred mismatch"
    assert jnp.allclose(all_prob1[0], all_prob[0], atol=1e-5), \
        "single vs batched prob mismatch"

    print("KERNEL_OK")
</pallas_src>

<mosaic_0001>
module attributes {stable_mosaic.version = 11 : i64} {
  func.func @_fused_head_kernel(%arg0: i32, %arg1: memref<8x768xf32, #tpu.memory_space<vmem>>, %arg2: memref<768x256xbf16, #tpu.memory_space<vmem>>, %arg3: memref<1x256xf32, #tpu.memory_space<vmem>>, %arg4: memref<256x128xbf16, #tpu.memory_space<vmem>>, %arg5: memref<1x128xf32, #tpu.memory_space<vmem>>, %arg6: memref<8x128xf32, #tpu.memory_space<vmem>>) attributes {dimension_semantics = [#tpu.dimension_semantics<parallel>], iteration_bounds = array<i64: 2>, scalar_prefetch = 0 : i64, scratch_operands = 0 : i64, tpu.core_type = #tpu.core_type<tc>, window_params = [{transform_indices = @transform_0, window_bounds = array<i64: 8, 768>}, {pipeline_mode = #tpu.pipeline_mode<synchronous>, transform_indices = @transform_1, window_bounds = array<i64: 768, 256>}, {pipeline_mode = #tpu.pipeline_mode<synchronous>, transform_indices = @transform_2, window_bounds = array<i64: 1, 256>}, {pipeline_mode = #tpu.pipeline_mode<synchronous>, transform_indices = @transform_3, window_bounds = array<i64: 256, 128>}, {pipeline_mode = #tpu.pipeline_mode<synchronous>, transform_indices = @transform_4, window_bounds = array<i64: 1, 128>}, {transform_indices = @transform_5, window_bounds = array<i64: 8, 128>}]} {
    %c0 = arith.constant 0 : index
    %c0_0 = arith.constant 0 : index
    %0 = vector.load %arg1[%c0, %c0_0] : memref<8x768xf32, #tpu.memory_space<vmem>>, vector<8x768xf32>
    %1 = arith.truncf %0 : vector<8x768xf32> to vector<8x768xbf16>
    %c0_1 = arith.constant 0 : index
    %c0_2 = arith.constant 0 : index
    %2 = vector.load %arg2[%c0_1, %c0_2] : memref<768x256xbf16, #tpu.memory_space<vmem>>, vector<768x256xbf16>
    %cst = arith.constant dense<0.000000e+00> : vector<8x256xf32>
    %3 = tpu.matmul %1, %2, %cst {dimension_numbers = #tpu.dot_dimension_numbers<[1], [0], [0], [1], [0, 0, 1, 1], [], []>} : vector<8x768xbf16>, vector<768x256xbf16>, vector<8x256xf32> -> vector<8x256xf32>
    %c0_3 = arith.constant 0 : index
    %c0_4 = arith.constant 0 : index
    %4 = vector.load %arg3[%c0_3, %c0_4] : memref<1x256xf32, #tpu.memory_space<vmem>>, vector<1x256xf32>
    %5 = vector.broadcast %4 : vector<1x256xf32> to vector<8x256xf32>
    %6 = arith.addf %3, %5 : vector<8x256xf32>
    %cst_5 = arith.constant 0.000000e+00 : f32
    %7 = vector.broadcast %cst_5 : f32 to vector<8x256xf32>
    %8 = arith.maximumf %6, %7 : vector<8x256xf32>
    %9 = arith.truncf %8 : vector<8x256xf32> to vector<8x256xbf16>
    %c0_6 = arith.constant 0 : index
    %c0_7 = arith.constant 0 : index
    %10 = vector.load %arg4[%c0_6, %c0_7] : memref<256x128xbf16, #tpu.memory_space<vmem>>, vector<256x128xbf16>
    %cst_8 = arith.constant dense<0.000000e+00> : vector<8x128xf32>
    %11 = tpu.matmul %9, %10, %cst_8 {dimension_numbers = #tpu.dot_dimension_numbers<[1], [0], [0], [1], [0, 0, 1, 1], [], []>} : vector<8x256xbf16>, vector<256x128xbf16>, vector<8x128xf32> -> vector<8x128xf32>
    %c0_9 = arith.constant 0 : index
    %c0_10 = arith.constant 0 : index
    %12 = vector.load %arg5[%c0_9, %c0_10] : memref<1x128xf32, #tpu.memory_space<vmem>>, vector<1x128xf32>
    %13 = vector.broadcast %12 : vector<1x128xf32> to vector<8x128xf32>
    %14 = arith.addf %11, %13 : vector<8x128xf32>
    %cst_11 = arith.constant dense<0xFF800000> : vector<8xf32>
    %15 = vector.multi_reduction <maximumf>, %14, %cst_11 [1] : vector<8x128xf32> to vector<8xf32>
    %16 = vector.shape_cast %15 : vector<8xf32> to vector<8x1xf32>
    %17 = vector.broadcast %16 : vector<8x1xf32> to vector<8x128xf32>
    %18 = arith.subf %14, %17 : vector<8x128xf32>
    %19 = math.exp %18 : vector<8x128xf32>
    %cst_12 = arith.constant dense<0.000000e+00> : vector<8xf32>
    %20 = vector.multi_reduction <add>, %19, %cst_12 [1] : vector<8x128xf32> to vector<8xf32>
    %21 = vector.shape_cast %20 : vector<8xf32> to vector<8x1xf32>
    %22 = tpu.reciprocal %21 {approx = true} : vector<8x1xf32> -> vector<8x1xf32>
    %23 = vector.broadcast %22 : vector<8x1xf32> to vector<8x128xf32>
    %24 = arith.mulf %19, %23 : vector<8x128xf32>
    %25 = tpu.iota {dimensions = array<i32: 1>} : vector<8x128xi32>
    %26 = vector.broadcast %16 : vector<8x1xf32> to vector<8x128xf32>
    %27 = arith.cmpf oge, %14, %26 : vector<8x128xf32>
    %c128_i32 = arith.constant 128 : i32
    %28 = vector.broadcast %c128_i32 : i32 to vector<8x128xi32>
    %29 = arith.select %27, %25, %28 : vector<8x128xi1>, vector<8x128xi32>
    %cst_13 = arith.constant dense<2147483647> : vector<8xi32>
    %30 = vector.multi_reduction <minsi>, %29, %cst_13 [1] : vector<8x128xi32> to vector<8xi32>
    %31 = vector.shape_cast %30 : vector<8xi32> to vector<8x1xi32>
    %32 = arith.sitofp %31 : vector<8x1xi32> to vector<8x1xf32>
    %c16_i32 = arith.constant 16 : i32
    %33 = vector.broadcast %c16_i32 : i32 to vector<8x128xi32>
    %34 = arith.cmpi eq, %25, %33 : vector<8x128xi32>
    %35 = vector.shape_cast %22 : vector<8x1xf32> to vector<8x1xf32>
    %36 = vector.broadcast %35 : vector<8x1xf32> to vector<8x128xf32>
    %37 = arith.select %34, %36, %24 : vector<8x128xi1>, vector<8x128xf32>
    %c17_i32 = arith.constant 17 : i32
    %38 = vector.broadcast %c17_i32 : i32 to vector<8x128xi32>
    %39 = arith.cmpi eq, %25, %38 : vector<8x128xi32>
    %40 = vector.shape_cast %32 : vector<8x1xf32> to vector<8x1xf32>
    %41 = vector.broadcast %40 : vector<8x1xf32> to vector<8x128xf32>
    %42 = arith.select %39, %41, %37 : vector<8x128xi1>, vector<8x128xf32>
    %c0_14 = arith.constant 0 : index
    %c0_15 = arith.constant 0 : index
    %43 = vector.load %arg6[%c0_14, %c0_15] : memref<8x128xf32, #tpu.memory_space<vmem>>, vector<8x128xf32>
    tpu.vector_store %arg6[%c0_14, %c0_15], %42 {strides = array<i32>} : memref<8x128xf32, #tpu.memory_space<vmem>>, vector<8x128xf32>,
    return
  }
  func.func @transform_0(%arg0: i32) -> (i32, i32) {
    %c0_i32 = arith.constant 0 : i32
    %c0_i32_0 = arith.constant 0 : i32
    return %arg0, %c0_i32 : i32, i32
  }
  func.func @transform_1(%arg0: i32) -> (i32, i32) {
    %c0_i32 = arith.constant 0 : i32
    %c0_i32_0 = arith.constant 0 : i32
    %c0_i32_1 = arith.constant 0 : i32
    return %c0_i32, %c0_i32_0 : i32, i32
  }
  func.func @transform_2(%arg0: i32) -> (i32, i32) {
    %c0_i32 = arith.constant 0 : i32
    %c0_i32_0 = arith.constant 0 : i32
    %c0_i32_1 = arith.constant 0 : i32
    return %c0_i32, %c0_i32_0 : i32, i32
  }
  func.func @transform_3(%arg0: i32) -> (i32, i32) {
    %c0_i32 = arith.constant 0 : i32
    %c0_i32_0 = arith.constant 0 : i32
    %c0_i32_1 = arith.constant 0 : i32
    return %c0_i32, %c0_i32_0 : i32, i32
  }
  func.func @transform_4(%arg0: i32) -> (i32, i32) {
    %c0_i32 = arith.constant 0 : i32
    %c0_i32_0 = arith.constant 0 : i32
    %c0_i32_1 = arith.constant 0 : i32
    return %c0_i32, %c0_i32_0 : i32, i32
  }
  func.func @transform_5(%arg0: i32) -> (i32, i32) {
    %c0_i32 = arith.constant 0 : i32
    %c0_i32_0 = arith.constant 0 : i32
    return %arg0, %c0_i32 : i32, i32
  }
}

</mosaic_0001>

<bundles_post_ra>
// kernel: tpu_custom_call.1
= control target key start
LH: loop header
LB: loop body
LE: loop exit
PB: predicated region body
PF: predicated region fallthrough
CT: control target
= control target key end

     0   :  { %10 = vsyncpa [#allocation3], 0  ;;  %s2070_s0 = inlined_call_operand.hbm [shape: f32[16,768], index: 0, kind: input, shape index: {}]   ;;  %s2071_s1 = inlined_call_operand.hbm [shape: bf16[768,256], index: 1, kind: input, shape index: {}]   ;;  %s2072_s2 = inlined_call_operand.vmem [shape: f32[1,256], index: 2, kind: input, shape index: {}]   ;;  %s2073_s3 = inlined_call_operand.hbm [shape: bf16[256,128], index: 3, kind: input, shape index: {}]   ;;  %s2074_s4 = inlined_call_operand.vmem [shape: f32[1,128], index: 4, kind: input, shape index: {}]   ;;  %s2075_s5 = inlined_call_operand.hbm [shape: f32[16,128], index: 5, kind: output, shape index: {}]  }
   0x1   :  { %12 = vsyncpa [#allocation3 + $0x1], 0 }
   0x2   :  { %13 = vsyncpa [#allocation6], 0 }
   0x3   :  { %14 = vsyncpa [#allocation4], 0 }
   0x4   :  { %16 = vsyncpa [#allocation4 + $0x1], 0  ;;  %s1884_s18 = smov 0   ;;  %s1886_s19 = smov 0  }
   0x5   :  { %s1888_s20 = smov 0   ;;  %s1890_s21 = smov 0  }
   0x6 LB: > { %s1905_s22 = sadd.s32 4294967295, %s1844_s21   ;;  %s1309_s23 = sadd.s32 4294967294, %s1844_s21   ;;  %s1844_s21 = sphi %s1890_s21, %s2097_s21   ;;  %s1840_s20 = sphi %s1888_s20, %s2096_s20   ;;  %s1836_s19 = sphi %s1886_s19, %s2095_s19   ;;  %s1832_s18 = sphi %s1884_s18, %s2094_s18  }
   0x7   : > { %p42_p0 = scmp.ne.s32.totalorder %s1836_s19, %s1832_s18  ;;  %p2076_p1 = scmp.eq.s32.totalorder %s1905_s22, 0 }
   0x8   : > { %p156_p3 = scmp.eq.s32.totalorder %s1309_s23, 1  ;;  %p1310_p5 = scmp.ge.s32.totalorder %s1844_s21, 1 }
   0x9   : > { %p1914_p4 = por %p2076_p1, %p42_p0  ;;  %p163_p7 = scmp.lt.s32.totalorder %s1844_s21, 3 }
   0xa   : > { %p1919_p6 = por %p156_p3, %p42_p0  ;;  %s1846_s27 = smov [#allocation5]  }
   0xb   : > { %s2080_s24 = scalar_select %p1914_p4, 1, 0 }
   0xc   : > { %s2081_s25 = scalar_select %p1919_p6, 1, 0 }
   0xd   : > { %p1924_p8 = pnand %p1310_p5, %p163_p7  ;;  %s175_s28 = sshll.u32 %s1846_s27, 4  ;;  %s176_s28 = int_to_ptr.vmem [resolvable:$true] %s175_s28 }
   0xe   : > { %s1847_s30 = smov [#allocation7]   ;;  %s1707_s7 = scalar_lea.vmem %s176_s28, 12288 }
   0xf   : > { %s2082_s26 = scalar_select %p1924_p8, 1, 0 }
  0x10   : > { %p1473_p9 = pneg %p1924_p8  ;;  %s191_s6 = sshll.u32 %s1847_s30, 4  ;;  %s192_s6 = int_to_ptr.vmem [resolvable:$true] %s191_s6 }
  0x11   : > { %p1708_p13 = scmp.ne.s32.totalorder %s176_s28, %s1707_s7  ;;  %p1715_p5 = scmp.lt.s32.totalorder %s176_s28, %s176_s28 }
  0x12   : > { %p1933_p11 = pnand %p1473_p9, %p2076_p1  ;;  %p1716_p7 = scmp.lt.s32.totalorder %s1707_s7, %s1707_s7 }
  0x14   : > { %p1698_p12 = pneg %p1933_p11  ;;  %p1717_p10 = por %p1716_p7, %p1715_p5 }
  0x16   : > { %p1710_p0 = pnand %p1708_p13, %p1698_p12 }
  0x18   : > { %p1711_p3 = pneg %p1710_p0 }
  0x1a   : > { %p1718_p9 = pnand %p1717_p10, %p1711_p3 }
  0x1c   : > { %1721 = shalt.err (!%p1718_p9)
}
  0x1d   : > { %s1848_s8 = smov 128   ;;  %s1849_s9 = smov 8  }
  0x1e   : > { %1476 = dma.hbm_to_vmem [thread:$0]  (!%p1933_p11), %s2071_s1, 12288, %s176_s28, [#allocation6], %s1848_s8, %s1848_s8, %s1849_s9  }
  0x1f   : > { %s1733_s12 = scalar_lea.vmem %s192_s6, 2048  ;;  %p1741_p2 = scmp.lt.s32.totalorder %s192_s6, %s192_s6 }
  0x20   : > { %p1734_p1 = scmp.ne.s32.totalorder %s192_s6, %s1733_s12  ;;  %p1742_p6 = scmp.lt.s32.totalorder %s1733_s12, %s1733_s12 }
  0x22   : > { %p1736_p13 = pnand %p1734_p1, %p1698_p12  ;;  %p1743_p5 = por %p1742_p6, %p1741_p2 }
  0x24   : > { %p1737_p0 = pneg %p1736_p13 }
  0x26   : > { %p1744_p10 = pnand %p1743_p5, %p1737_p0 }
  0x28   : > { %1747 = shalt.err (!%p1744_p10)
}
  0x29   : > { %s1850_s13 = smov 64   ;;  %s1851_s14 = smov 4  }
  0x2a   : > { %1479 = dma.hbm_to_vmem [thread:$0]  (!%p1933_p11), %s2073_s3, 2048, %s192_s6, [#allocation6], %s1850_s13, %s1850_s13, %s1851_s14  }
  0x2b   : > { %s1956_s17 = sadd.s32 1, %s1844_s21   ;;  %s29_s27 = sadd.s32 1, %s1840_s20 }
  0x2c   : > { %s26_s23 = ssub.s32 %s1844_s21, %s1956_s17  ;;  %p36_p2 = scmp.ne.s32.totalorder %s1840_s20, %s1836_s19 }
  0x2d   : > { %p27_p1 = scmp.eq.s32.totalorder %s26_s23, 0  ;;  %p37_p6 = scmp.eq.s32.totalorder %s1844_s21, 0 }
  0x2e   : > { %p2084_p3 = scmp.eq.s32.totalorder %s1905_s22, 1  ;;  %p1490_p9 = scmp.lt.s32.totalorder %s1844_s21, 2 }
  0x2f   : > { %s1965_s28 = scalar_select %p27_p1, %s1840_s20, %s29_s27  }
  0x30   : > { %p38_p12 = por %p37_p6, %p36_p2  ;;  %p1969_p7 = por %p2084_p3, %p36_p2 }
  0x31   : > { %s208_s29 = sand.u32 1, %s1840_s20   ;;  %s1459_s6 = smul.u32 768, %s1844_s21 }
  0x32   : > { %s2085_s30 = scalar_select %p1969_p7, 1, 0 }
  0x33   : > { %s1458_s7 = smul.u32 48, %s208_s29  ;;  %p1976_p11 = pnand %p1490_p9, %p38_p12 }
  0x34   : > { %s1983_s11 = scalar_lea.hbm %s2070_s0, %s1459_s6  ;;  %s209_s14 = scalar_lea.sflag [#allocation3], %s208_s29 }
  0x35   : > { %s212_s12 = scalar_lea.vmem [#allocation2], %s1458_s7  ;;  %s1748_s15 = scalar_lea.hbm %s1983_s11, 768 }
  0x36   : > { %s220_s13 = sshll.u32 %s212_s12, 4  ;;  %p1749_p13 = scmp.ne.s32.totalorder %s1983_s11, %s1748_s15  ;;  %s221_s13 = int_to_ptr.vmem [resolvable:$true] %s220_s13 }
  0x37   : > { %p1750_p0 = pneg %p1976_p11  ;;  %s1753_s27 = scalar_lea.hbm %s2070_s0, 1536 }
  0x38   : > { %p1754_p1 = scmp.lt.s32.totalorder %s1983_s11, %s2070_s0  ;;  %p1755_p2 = scmp.lt.s32.totalorder %s1753_s27, %s1748_s15 }
  0x39   : > { %p1751_p5 = pnand %p1750_p0, %p1749_p13 }
  0x3a   : > { %p1756_p6 = por %p1755_p2, %p1754_p1 }
  0x3b   : > { %p1752_p10 = pneg %p1751_p5 }
  0x3d   : > { %p1757_p12 = pnand %p1756_p6, %p1752_p10 }
  0x3f   : > { %1760 = shalt.err (!%p1757_p12)
}
  0x40   : > { %s1761_s7 = scalar_lea.vmem %s221_s13, 768  ;;  %s1852_s29 = smov [#allocation2]  }
  0x41   : > { %p1762_p3 = scmp.ne.s32.totalorder %s221_s13, %s1761_s7  ;;  %s1766_s10 = sshll.u32 %s1852_s29, 4  ;;  %s1767_s10 = int_to_ptr.vmem [resolvable:$false] %s1766_s10 }
  0x42   : > { %s1768_s12 = scalar_lea.vmem %s1767_s10, 1536  ;;  %p1769_p13 = scmp.lt.s32.totalorder %s221_s13, %s1767_s10 }
  0x43   : > { %p1764_p9 = pnand %p1762_p3, %p1750_p0  ;;  %p1770_p5 = scmp.lt.s32.totalorder %s1768_s12, %s1761_s7 }
  0x45   : > { %p1765_p7 = pneg %p1764_p9  ;;  %p1771_p4 = por %p1770_p5, %p1769_p13 }
  0x47   : > { %p1772_p8 = pnand %p1771_p4, %p1765_p7 }
  0x49   : > { %1775 = shalt.err (!%p1772_p8)
}
  0x4a   : > { %1483 = dma.hbm_to_vmem [thread:$0]  (!%p1976_p11), %s1983_s11, 768, %s221_s13, %s209_s14  }
  0x4b   : > { %p2087_p10 = scmp.ne.s32.totalorder %s2082_s26, 0 }
  0x4c   : > { %s2002_s15 = sand.u32 (!%p2087_p10), 1, %s1836_s19   ;;  %p2088_p0 = scmp.ne.s32.totalorder (!%p2087_p10), %s2080_s24, 0 }
  0x4d   : > { %229 = sbr.rel (%p2087_p10) target bundleno = 1058 (0x422), region = 40  ;;  %s232_s23 = scalar_lea.sflag (!%p2087_p10), [#allocation3], %s2002_s15 }
  0x4e   : > { %s1460_s16 = smul.u32 (!%p2087_p10), 48, %s2002_s15 }
  0x50   : > { %s2006_s27 = scalar_lea.vmem (!%p2087_p10), [#allocation2], %s1460_s16 }
  0x52   : > { %1819 = dma.done.wait (%p2088_p0), %s232_s23, 768  }
  0x53   : > { %1821 = vsyncadd (%p2088_p0), %s232_s23, 4294966528  ;;  %p2089_p4 = scmp.eq.s32.totalorder %s1905_s22, 0 }
  0x55   : > { %1823 = dma.done.wait (%p2089_p4), [#allocation6], 14336   ;;  %p2090_p8 = pmov %p2089_p4 }
  0x56   : > { %v1532_v0 = vld [vmem:[#allocation5 + $0x74] ss:$8 sps:$4 sm:$0xff]   ;;  %v1534_v1 = vld [vmem:[#allocation5 + $0x70] ss:$8 sps:$4 sm:$0xff]   ;;  %v1538_v4 = vld [vmem:[#allocation5 + $0x64] ss:$8 sps:$4 sm:$0xff]  }
  0x57   : > { %1825 = vsyncadd (%p2090_p8), [#allocation6], 4294952960  ;;  %871 = vmatprep.subr.bf16.mxu0 %v1532_v0  ;;  %v1535_v2 = vld [vmem:[#allocation5 + $0x174] ss:$8 sps:$4 sm:$0xff]   ;;  %v1537_v3 = vld [vmem:[#allocation5 + $0x170] ss:$8 sps:$4 sm:$0xff]  }
  0x58   : > { %872 = vmatpush1.bf16.msra.mxu0 %v1534_v1  ;;  %v1540_v5 = vld [vmem:[#allocation5 + $0x60] ss:$8 sps:$4 sm:$0xff]   ;;  %912 = vmatprep.subr.bf16.mxu1 %v1535_v2  ;;  %v1541_v6 = vld [vmem:[#allocation5 + $0x164] ss:$8 sps:$4 sm:$0xff]   ;;  %v1544_v8 = vld [vmem:[#allocation5 + $0x54] ss:$8 sps:$4 sm:$0xff]  }
  0x59   : > { %913 = vmatpush1.bf16.msra.mxu1 %v1537_v3  ;;  %873 = vmatprep.subr.bf16.mxu0 %v1538_v4  ;;  %v1543_v7 = vld [vmem:[#allocation5 + $0x160] ss:$8 sps:$4 sm:$0xff]   ;;  %v1546_v9 = vld [vmem:[#allocation5 + $0x50] ss:$8 sps:$4 sm:$0xff]   ;;  %v1547_v10 = vld [vmem:[#allocation5 + $0x154] ss:$8 sps:$4 sm:$0xff]  }
  0x5a   : > { %914 = vmatprep.subr.bf16.mxu1 %v1541_v6  ;;  %v1550_v11 = vld [vmem:[#allocation5 + $0x44] ss:$8 sps:$4 sm:$0xff]   ;;  %v1549_v12 = vld [vmem:[#allocation5 + $0x150] ss:$8 sps:$4 sm:$0xff]   ;;  %v1552_v14 = vld [vmem:[#allocation5 + $0x40] ss:$8 sps:$4 sm:$0xff]  }
  0x5b   : > { %v1553_v13 = vld [vmem:[#allocation5 + $0x144] ss:$8 sps:$4 sm:$0xff]   ;;  %v1556_v15 = vld [vmem:[#allocation5 + $0x34] ss:$8 sps:$4 sm:$0xff]   ;;  %v1555_v16 = vld [vmem:[#allocation5 + $0x140] ss:$8 sps:$4 sm:$0xff]  }
  0x5c   : > { %874 = vmatpush1.bf16.msra.mxu0 %v1540_v5  ;;  %v1559_v17 = vld [vmem:[#allocation5 + $0x134] ss:$8 sps:$4 sm:$0xff]   ;;  %v1558_v18 = vld [vmem:[#allocation5 + $0x30] ss:$8 sps:$4 sm:$0xff]   ;;  %v1562_v19 = vld [vmem:[#allocation5 + $0x24] ss:$8 sps:$4 sm:$0xff]  }
  0x5d   : > { %875 = vmatprep.subr.bf16.mxu0 %v1544_v8  ;;  %915 = vmatpush1.bf16.msra.mxu1 %v1543_v7  ;;  %v1561_v20 = vld [vmem:[#allocation5 + $0x130] ss:$8 sps:$4 sm:$0xff]   ;;  %v1565_v21 = vld [vmem:[#allocation5 + $0x124] ss:$8 sps:$4 sm:$0xff]   ;;  %v1564_v22 = vld [vmem:[#allocation5 + $0x20] ss:$8 sps:$4 sm:$0xff]  }
  0x5e   : > { %916 = vmatprep.subr.bf16.mxu1 %v1547_v10  ;;  %v1568_v23 = vld [vmem:[#allocation5 + $0x14] ss:$8 sps:$4 sm:$0xff]   ;;  %v1567_v24 = vld [vmem:[#allocation5 + $0x120] ss:$8 sps:$4 sm:$0xff]   ;;  %v1570_v26 = vld [vmem:[#allocation5 + $0x10] ss:$8 sps:$4 sm:$0xff]  }
  0x5f   : > { %v1571_v25 = vld [vmem:[#allocation5 + $0x114] ss:$8 sps:$4 sm:$0xff]   ;;  %v1574_v27 = vld [vmem:[#allocation5 + $0x4] ss:$8 sps:$4 sm:$0xff]   ;;  %v1573_v28 = vld [vmem:[#allocation5 + $0x110] ss:$8 sps:$4 sm:$0xff]  }
  0x60   : > { %876 = vmatpush1.bf16.msra.mxu0 %v1546_v9  ;;  %v1577_v29 = vld [vmem:[#allocation5 + $0x104] ss:$8 sps:$4 sm:$0xff]   ;;  %v1576_v30 = vld [vmem:[#allocation5] ss:$8 sps:$4 sm:$0xff]   ;;  %v1580_v31 = vld [vmem:[#allocation5 + $0xf4] ss:$8 sps:$4 sm:$0xff]  }
  0x61   : > { %877 = vmatprep.subr.bf16.mxu0 %v1550_v11  ;;  %917 = vmatpush1.bf16.msra.mxu1 %v1549_v12  ;;  %v1579_v32 = vld [vmem:[#allocation5 + $0x100] ss:$8 sps:$4 sm:$0xff]   ;;  %v1583_v33 = vld [vmem:[#allocation5 + $0x1f4] ss:$8 sps:$4 sm:$0xff]   ;;  %v1582_v34 = vld [vmem:[#allocation5 + $0xf0] ss:$8 sps:$4 sm:$0xff]  }
  0x62   : > { %918 = vmatprep.subr.bf16.mxu1 %v1553_v13  ;;  %v1586_v35 = vld [vmem:[#allocation5 + $0xe4] ss:$8 sps:$4 sm:$0xff]   ;;  %v1585_v36 = vld [vmem:[#allocation5 + $0x1f0] ss:$8 sps:$4 sm:$0xff]   ;;  %v1588_v38 = vld [vmem:[#allocation5 + $0xe0] ss:$8 sps:$4 sm:$0xff]  }
  0x63   : > { %v1589_v37 = vld [vmem:[#allocation5 + $0x1e4] ss:$8 sps:$4 sm:$0xff]   ;;  %v1592_v39 = vld [vmem:[#allocation5 + $0xd4] ss:$8 sps:$4 sm:$0xff]   ;;  %v1591_v40 = vld [vmem:[#allocation5 + $0x1e0] ss:$8 sps:$4 sm:$0xff]  }
  0x64   : > { %878 = vmatpush1.bf16.msra.mxu0 %v1552_v14  ;;  %v1595_v41 = vld [vmem:[#allocation5 + $0x1d4] ss:$8 sps:$4 sm:$0xff]   ;;  %v1594_v42 = vld [vmem:[#allocation5 + $0xd0] ss:$8 sps:$4 sm:$0xff]   ;;  %v1598_v43 = vld [vmem:[#allocation5 + $0xc4] ss:$8 sps:$4 sm:$0xff]  }
  0x65   : > { %879 = vmatprep.subr.bf16.mxu0 %v1556_v15  ;;  %919 = vmatpush1.bf16.msra.mxu1 %v1555_v16  ;;  %v1597_v44 = vld [vmem:[#allocation5 + $0x1d0] ss:$8 sps:$4 sm:$0xff]   ;;  %v1601_v45 = vld [vmem:[#allocation5 + $0x1c4] ss:$8 sps:$4 sm:$0xff]   ;;  %v1600_v47 = vld [vmem:[#allocation5 + $0xc0] ss:$8 sps:$4 sm:$0xff]  }
  0x66   : > { %920 = vmatprep.subr.bf16.mxu1 %v1559_v17  ;;  %v272_v46 = vld [vmem:[%s2006_s27 + $0x8] sm:$0xff]  ;;  %v274_v50 = vld [vmem:[%s2006_s27 + $0x18] sm:$0xff]  ;;  %v271_v4 = vld [vmem:[%s2006_s27] sm:$0xff]  ;;  %s1318_s13 = sshll.u32 %s2002_s15, 3  ;;  %s1433_s14 = sshll.u32 %s1905_s22, 7 }
  0x67   : > { %v278_v48 = vpack.c.bf16 %v272_v46, %v272_v46  ;;  %v1604_v49 = vld [vmem:[#allocation5 + $0xb4] ss:$8 sps:$4 sm:$0xff]   ;;  %v1603_v51 = vld [vmem:[#allocation5 + $0x1c0] ss:$8 sps:$4 sm:$0xff]   ;;  %v280_v52 = vpack.c.bf16 %v274_v50, %v274_v50  ;;  %v1606_v54 = vld [vmem:[#allocation5 + $0xb0] ss:$8 sps:$4 sm:$0xff]   ;;  %v277_v7 = vpack.c.bf16 %v271_v4, %v271_v4  ;;  %v381_v4 = vlaneseq  ;;  %s2033_s10 = scalar_lea.hbm %s2075_s5, %s1433_s14 }
  0x68   : > { %880 = vmatpush1.bf16.msra.mxu0 %v1558_v18  ;;  %v1607_v53 = vld [vmem:[#allocation5 + $0x1b4] ss:$8 sps:$4 sm:$0xff]   ;;  %v1610_v55 = vld [vmem:[#allocation5 + $0xa4] ss:$8 sps:$4 sm:$0xff]   ;;  %v1609_v56 = vld [vmem:[#allocation5 + $0x1b0] ss:$8 sps:$4 sm:$0xff]  }
  0x69   : > { %881 = vmatprep.subr.bf16.mxu0 %v1562_v19  ;;  %921 = vmatpush1.bf16.msra.mxu1 %v1561_v20  ;;  %v1613_v57 = vld [vmem:[#allocation5 + $0x1a4] ss:$8 sps:$4 sm:$0xff]   ;;  %v1612_v58 = vld [vmem:[#allocation5 + $0xa0] ss:$8 sps:$4 sm:$0xff]   ;;  %v1616_v59 = vld [vmem:[#allocation5 + $0x94] ss:$8 sps:$4 sm:$0xff]  }
  0x6a   : > { %922 = vmatprep.subr.bf16.mxu1 %v1565_v21  ;;  %903 = vmatprep.mubr.bf16.mxu0 %v278_v48  ;;  %v1615_v60 = vld [vmem:[#allocation5 + $0x1a0] ss:$8 sps:$4 sm:$0xff]   ;;  %v1619_v61 = vld [vmem:[#allocation5 + $0x194] ss:$8 sps:$4 sm:$0xff]   ;;  %v1618_v62 = vld [vmem:[#allocation5 + $0x90] ss:$8 sps:$4 sm:$0xff]  }
  0x6b   : > { %944 = vmatprep.mubr.bf16.mxu1 %v280_v52  ;;  %v1622_v63 = vld [vmem:[#allocation5 + $0x84] ss:$8 sps:$4 sm:$0xff]   ;;  %v1621_v0 = vld [vmem:[#allocation5 + $0x190] ss:$8 sps:$4 sm:$0xff]   ;;  %v1624_v1 = vld [vmem:[#allocation5 + $0x80] ss:$8 sps:$4 sm:$0xff]  }
  0x6c   : > { %882 = vmatpush1.bf16.msra.mxu0 %v1564_v22  ;;  %v1625_v2 = vld [vmem:[#allocation5 + $0x184] ss:$8 sps:$4 sm:$0xff]   ;;  %v1627_v3 = vld [vmem:[#allocation5 + $0x180] ss:$8 sps:$4 sm:$0xff]   ;;  %v1630_v5 = vld [vmem:[#allocation5 + $0x274] ss:$8 sps:$4 sm:$0xff]  }
  0x6d   : > { %883 = vmatprep.subr.bf16.mxu0 %v1568_v23  ;;  %923 = vmatpush1.bf16.msra.mxu1 %v1567_v24  ;;  %v273_v6 = vld [vmem:[%s2006_s27 + $0x10] sm:$0xff]  ;;  %v276_v12 = vld [vmem:[%s2006_s27 + $0x28] sm:$0xff]  ;;  %s269_s9 = scalar_lea.vmem [#allocation8], %s1318_s13  ;;  %s1207_s12 = scalar_lea.sflag [#allocation4], %s2002_s15 }
  0x6e   : > { %924 = vmatprep.subr.bf16.mxu1 %v1571_v25  ;;  %v1628_v8 = vld [vmem:[#allocation5 + $0x270] ss:$8 sps:$4 sm:$0xff]   ;;  %v279_v9 = vpack.c.bf16 %v273_v6, %v273_v6  ;;  %v1633_v10 = vld [vmem:[#allocation5 + $0x264] ss:$8 sps:$4 sm:$0xff]   ;;  %v1631_v11 = vld [vmem:[#allocation5 + $0x260] ss:$8 sps:$4 sm:$0xff]   ;;  %v282_v14 = vpack.c.bf16 %v276_v12, %v276_v12 }
  0x6f   : > { %v1636_v13 = vld [vmem:[#allocation5 + $0x254] ss:$8 sps:$4 sm:$0xff]   ;;  %v1634_v15 = vld [vmem:[#allocation5 + $0x250] ss:$8 sps:$4 sm:$0xff]   ;;  %v1639_v16 = vld [vmem:[#allocation5 + $0x244] ss:$8 sps:$4 sm:$0xff]  }
  0x70   : > { %884 = vmatpush1.bf16.msra.mxu0 %v1570_v26  ;;  %v1637_v17 = vld [vmem:[#allocation5 + $0x240] ss:$8 sps:$4 sm:$0xff]   ;;  %v1642_v18 = vld [vmem:[#allocation5 + $0x234] ss:$8 sps:$4 sm:$0xff]   ;;  %v1640_v19 = vld [vmem:[#allocation5 + $0x230] ss:$8 sps:$4 sm:$0xff]  }
  0x71   : > { %885 = vmatprep.subr.bf16.mxu0 %v1574_v27  ;;  %925 = vmatpush1.bf16.msra.mxu1 %v1573_v28  ;;  %v1645_v20 = vld [vmem:[#allocation5 + $0x224] ss:$8 sps:$4 sm:$0xff]   ;;  %v1643_v21 = vld [vmem:[#allocation5 + $0x220] ss:$8 sps:$4 sm:$0xff]   ;;  %v1648_v22 = vld [vmem:[#allocation5 + $0x214] ss:$8 sps:$4 sm:$0xff]  }
  0x72   : > { %926 = vmatprep.subr.bf16.mxu1 %v1577_v29  ;;  %v1646_v23 = vld [vmem:[#allocation5 + $0x210] ss:$8 sps:$4 sm:$0xff]   ;;  %v1651_v24 = vld [vmem:[#allocation5 + $0x204] ss:$8 sps:$4 sm:$0xff]   ;;  %v1649_v25 = vld [vmem:[#allocation5 + $0x200] ss:$8 sps:$4 sm:$0xff]  }
  0x73   : > { %v1654_v26 = vld [vmem:[#allocation5 + $0x2f4] ss:$8 sps:$4 sm:$0xff]   ;;  %v1652_v27 = vld [vmem:[#allocation5 + $0x2f0] ss:$8 sps:$4 sm:$0xff]   ;;  %v1657_v28 = vld [vmem:[#allocation5 + $0x2e4] ss:$8 sps:$4 sm:$0xff]  }
  0x74   : > { %886 = vmatpush1.bf16.msra.mxu0 %v1576_v30  ;;  %v1655_v29 = vld [vmem:[#allocation5 + $0x2e0] ss:$8 sps:$4 sm:$0xff]   ;;  %v1660_v30 = vld [vmem:[#allocation5 + $0x2d4] ss:$8 sps:$4 sm:$0xff]   ;;  %s1220_s6 = sshll.u32 %s269_s9, 4  ;;  %p2091_p11 = scmp.ne.s32.totalorder %s2085_s30, 0  ;;  %s1221_s6 = int_to_ptr.vmem [resolvable:$true] %s1220_s6 }
  0x75   : > { %887 = vmatprep.subr.bf16.mxu0 %v1580_v31  ;;  %927 = vmatpush1.bf16.msra.mxu1 %v1579_v32  ;;  %v1658_v31 = vld [vmem:[#allocation5 + $0x2d0] ss:$8 sps:$4 sm:$0xff]   ;;  %v1663_v32 = vld [vmem:[#allocation5 + $0x2c4] ss:$8 sps:$4 sm:$0xff]   ;;  %s1776_s16 = scalar_lea.vmem %s1221_s6, 128  ;;  %s1853_s22 = smov [#allocation8]  }
  0x76   : > { %928 = vmatprep.subr.bf16.mxu1 %v1583_v33  ;;  %v1661_v33 = vld [vmem:[#allocation5 + $0x2c0] ss:$8 sps:$4 sm:$0xff]   ;;  %v1678_v46 = vld [vmem:[#allocation7 + $0x70] sm:$0xff]   ;;  %v1684_v52 = vld [vmem:[#allocation7 + $0x58] sm:$0xff]   ;;  %p1777_p7 = scmp.ne.s32.totalorder %s1221_s6, %s1776_s16  ;;  %s1780_s23 = sshll.u32 %s1853_s22, 4  ;;  %s1781_s23 = int_to_ptr.vmem [resolvable:$false] %s1780_s23 }
  0x77   : > { %v1680_v48 = vld [vmem:[#allocation7 + $0x68] sm:$0xff]   ;;  %v1682_v50 = vld [vmem:[#allocation7 + $0x60] sm:$0xff]   ;;  %p1783_p6 = scmp.lt.s32.totalorder %s1221_s6, %s1781_s23 }
  0x78   : > { %888 = vmatpush2.bf16.msra.mxu0 %v1582_v34  ;;  %v1666_v34 = vld [vmem:[#allocation5 + $0x2b4] ss:$8 sps:$4 sm:$0xff]   ;;  %p1778_p1 = pnand %p1777_p7, %p2091_p11 }
  0x79   : > { %889 = vmatprep.subr.bf16.mxu0 %v1586_v35  ;;  %929 = vmatpush2.bf16.msra.mxu1 %v1585_v36  ;;  %v1664_v35 = vld [vmem:[#allocation5 + $0x2b0] ss:$8 sps:$4 sm:$0xff]   ;;  %v1669_v36 = vld [vmem:[#allocation5 + $0x2a4] ss:$8 sps:$4 sm:$0xff]  }
  0x7a   : > { %930 = vmatprep.subr.bf16.mxu1 %v1589_v37  ;;  %v1667_v37 = vld [vmem:[#allocation5 + $0x2a0] ss:$8 sps:$4 sm:$0xff]   ;;  %p1779_p2 = pneg %p1778_p1 }
  0x7c   : > { %890 = vmatpush2.bf16.msra.mxu0 %v1588_v38  ;;  %v1672_v38 = vld [vmem:[#allocation5 + $0x294] ss:$8 sps:$4 sm:$0xff]  }
  0x7d   : > { %891 = vmatprep.subr.bf16.mxu0 %v1592_v39  ;;  %931 = vmatpush2.bf16.msra.mxu1 %v1591_v40  ;;  %v1670_v39 = vld [vmem:[#allocation5 + $0x290] ss:$8 sps:$4 sm:$0xff]   ;;  %v1675_v40 = vld [vmem:[#allocation5 + $0x284] ss:$8 sps:$4 sm:$0xff]  }
  0x7e   : > { %932 = vmatprep.subr.bf16.mxu1 %v1595_v41  ;;  %v1673_v41 = vld [vmem:[#allocation5 + $0x280] ss:$8 sps:$4 sm:$0xff]  }
  0x80   : > { %892 = vmatpush2.bf16.msra.mxu0 %v1594_v42  ;;  %v275_v42 = vld [vmem:[%s2006_s27 + $0x20] sm:$0xff]  ;;  %s1782_s27 = scalar_lea.vmem %s1781_s23, 256 }
  0x81   : > { %893 = vmatprep.subr.bf16.mxu0 %v1598_v43  ;;  %933 = vmatpush2.bf16.msra.mxu1 %v1597_v44  ;;  %v281_v43 = vpack.c.bf16 %v275_v42, %v275_v42  ;;  %v1676_v44 = vld [vmem:[#allocation7 + $0x78] sm:$0xff]   ;;  %p1784_p12 = scmp.lt.s32.totalorder %s1782_s27, %s1776_s16 }
  0x82   : > { %934 = vmatprep.subr.bf16.mxu1 %v1601_v45  ;;  %v1677_v45 = vld [vmem:[#allocation7 + $0x38] sm:$0xff]  }
  0x83   : > { %p1785_p3 = por %p1784_p12, %p1783_p6 }
  0x84   : > { %894 = vmatpush2.bf16.msra.mxu0 %v1600_v47  ;;  %v1679_v47 = vld [vmem:[#allocation7 + $0x30] sm:$0xff]  }
  0x85   : > { %895 = vmatprep.subr.bf16.mxu0 %v1604_v49  ;;  %935 = vmatpush2.bf16.msra.mxu1 %v1603_v51  ;;  %v1681_v49 = vld [vmem:[#allocation7 + $0x28] sm:$0xff]   ;;  %v1683_v51 = vld [vmem:[#allocation7 + $0x20] sm:$0xff]   ;;  %p1786_p9 = pnand %p1785_p3, %p1779_p2 }
  0x86   : > { %936 = vmatprep.subr.bf16.mxu1 %v1607_v53  ;;  %v1685_v53 = vld [vmem:[#allocation7 + $0x18] sm:$0xff]  }
  0x88   : > { %896 = vmatpush2.bf16.msra.mxu0 %v1606_v54  ;;  %v1686_v54 = vld [vmem:[#allocation7 + $0x50] sm:$0xff]  }
  0x89   : > { %897 = vmatprep.subr.bf16.mxu0 %v1610_v55  ;;  %937 = vmatpush2.bf16.msra.mxu1 %v1609_v56  ;;  %v1687_v55 = vld [vmem:[#allocation7 + $0x10] sm:$0xff]   ;;  %v1688_v56 = vld [vmem:[#allocation7 + $0x48] sm:$0xff]  }
  0x8a   : > { %938 = vmatprep.subr.bf16.mxu1 %v1613_v57  ;;  %v1689_v57 = vld [vmem:[#allocation7 + $0x8] sm:$0xff]  }
  0x8c   : > { %898 = vmatpush2.bf16.msra.mxu0 %v1612_v58  ;;  %v1690_v58 = vld [vmem:[#allocation7 + $0x40] sm:$0xff]  }
  0x8d   : > { %899 = vmatprep.subr.bf16.mxu0 %v1616_v59  ;;  %939 = vmatpush2.bf16.msra.mxu1 %v1615_v60  ;;  %v1691_v59 = vld [vmem:[#allocation7] sm:$0xff]  }
  0x8e   : > { %940 = vmatprep.subr.bf16.mxu1 %v1619_v61 }
  0x90   : > { %900 = vmatpush2.bf16.msra.mxu0 %v1618_v62 }
  0x91   : > { %901 = vmatprep.subr.bf16.mxu0 %v1622_v63  ;;  %941 = vmatpush2.bf16.msra.mxu1 %v1621_v0 }
  0x92   : > { %942 = vmatprep.subr.bf16.mxu1 %v1625_v2 }
  0x94   : > { %902 = vmatpush2.bf16.msra.mxu0 %v1624_v1 }
  0x95   : > { %953 = vmatprep.subr.bf16.mxu0 %v1630_v5  ;;  %943 = vmatpush2.bf16.msra.mxu1 %v1627_v3  ;;  %v382_v5 = vshrl.u32 %v381_v4, 7 }
  0x96   : > { %1436 = vmatprep.subr.bf16.mxu1 %v1676_v44 }
  0x97   : > { %904 = vmatmul.mubr.bf16.vlgmr.msra.gmra.mxu0 %v277_v7  ;;  %v383_v6 = vsub.s32 0, %v382_v5  ;;  %v379_v7 = vld [vmem:[%s2072_s2] sm:$0x3] }
  0x98   : > { %954 = vmatpush1.bf16.msra.mxu0 %v1628_v8  ;;  %945 = vmatmul.mubr.bf16.vlgmr.msra.gmra.mxu1 %v279_v9  ;;  %v387_v8 = vsub.s32 1, %v382_v5 }
  0x99   : > { %955 = vmatprep.subr.bf16.mxu0 %v1633_v10  ;;  %985 = vmatprep.mubr.bf16.mxu0 %v282_v14  ;;  %v384_v9 = vrot.slane %v379_v7, %v383_v6 }
  0x9a   : > { %1437 = vmatpush3.bf16.msra.mxu1 %v1677_v45  ;;  %v388_v10 = vrot.slane %v379_v7, %v387_v8 }
  0x9b   : > { %1438 = vmatprep.subr.bf16.mxu1 %v1678_v46 }
  0x9c   : > { %956 = vmatpush1.bf16.msra.mxu0 %v1631_v11 }
  0x9d   : > { %957 = vmatprep.subr.bf16.mxu0 %v1636_v13 }
  0x9e   : > { %1439 = vmatpush3.bf16.msra.mxu1 %v1679_v47 }
  0x9f   : > { %1440 = vmatprep.subr.bf16.mxu1 %v1680_v48 }
  0xa0   : > { %958 = vmatpush1.bf16.msra.mxu0 %v1634_v15 }
  0xa1   : > { %959 = vmatprep.subr.bf16.mxu0 %v1639_v16 }
  0xa2   : > { %1441 = vmatpush3.bf16.msra.mxu1 %v1681_v49 }
  0xa3   : > { %1442 = vmatprep.subr.bf16.mxu1 %v1682_v50 }
  0xa4   : > { %960 = vmatpush1.bf16.msra.mxu0 %v1637_v17 }
  0xa5   : > { %961 = vmatprep.subr.bf16.mxu0 %v1642_v18 }
  0xa6   : > { %1443 = vmatpush3.bf16.msra.mxu1 %v1683_v51 }
  0xa7   : > { %1444 = vmatprep.subr.bf16.mxu1 %v1684_v52 }
  0xa8   : > { %962 = vmatpush1.bf16.msra.mxu0 %v1640_v19 }
  0xa9   : > { %963 = vmatprep.subr.bf16.mxu0 %v1645_v20 }
  0xaa   : > { %1445 = vmatpush3.bf16.msra.mxu1 %v1685_v53 }
  0xab   : > { %1446 = vmatprep.subr.bf16.mxu1 %v1686_v54 }
  0xac   : > { %964 = vmatpush1.bf16.msra.mxu0 %v1643_v21 }
  0xad   : > { %965 = vmatprep.subr.bf16.mxu0 %v1648_v22 }
  0xae   : > { %1447 = vmatpush3.bf16.msra.mxu1 %v1687_v55 }
  0xaf   : > { %1448 = vmatprep.subr.bf16.mxu1 %v1688_v56 }
  0xb0   : > { %966 = vmatpush1.bf16.msra.mxu0 %v1646_v23 }
  0xb1   : > { %967 = vmatprep.subr.bf16.mxu0 %v1651_v24 }
  0xb2   : > { %1449 = vmatpush3.bf16.msra.mxu1 %v1689_v57 }
  0xb3   : > { %1450 = vmatprep.subr.bf16.mxu1 %v1690_v58 }
  0xb4   : > { %968 = vmatpush1.bf16.msra.mxu0 %v1649_v25 }
  0xb5   : > { %969 = vmatprep.subr.bf16.mxu0 %v1654_v26  ;;  %v1415_v26 = vld [vmem:[%s2074_s4] ss:$0 sm:$0xff] }
  0xb6   : > { %1451 = vmatpush3.bf16.msra.mxu1 %v1691_v59 }
  0xb8   : > { %970 = vmatpush2.bf16.msra.mxu0 %v1652_v27 }
  0xb9   : > { %971 = vmatprep.subr.bf16.mxu0 %v1657_v28 }
  0xbc   : > { %972 = vmatpush2.bf16.msra.mxu0 %v1655_v29 }
  0xbd   : > { %973 = vmatprep.subr.bf16.mxu0 %v1660_v30 }
  0xc0   : > { %974 = vmatpush2.bf16.msra.mxu0 %v1658_v31 }
  0xc1   : > { %975 = vmatprep.subr.bf16.mxu0 %v1663_v32  ;;  %v1183_v32 = vand.u32 127, %v381_v4 }
  0xc3   : > { %vm1201_vm2 = vcmp.eq.s32.totalorder %v1183_v32, 16  ;;  %vm1203_vm3 = vcmp.eq.s32.totalorder %v1183_v32, 17 }
  0xc4   : > { %976 = vmatpush2.bf16.msra.mxu0 %v1661_v33 }
  0xc5   : > { %977 = vmatprep.subr.bf16.mxu0 %v1666_v34 }
  0xc8   : > { %978 = vmatpush2.bf16.msra.mxu0 %v1664_v35 }
  0xc9   : > { %979 = vmatprep.subr.bf16.mxu0 %v1669_v36 }
  0xcc   : > { %980 = vmatpush2.bf16.msra.mxu0 %v1667_v37 }
  0xcd   : > { %981 = vmatprep.subr.bf16.mxu0 %v1672_v38 }
  0xd0   : > { %982 = vmatpush2.bf16.msra.mxu0 %v1670_v39 }
  0xd1   : > { %983 = vmatprep.subr.bf16.mxu0 %v1675_v40 }
  0xd4   : > { %984 = vmatpush2.bf16.msra.mxu0 %v1673_v41 }
  0xd7   : > { %986 = vmatmul.mubr.bf16.vlgmr.msra.gmra.mxu0 %v281_v43 }
 0x157   : > { %v905_v60 = vpop.f32.mrf.mxu0 }
 0x158   : > { %v946_v62 = vpop.f32.mrf.mxu1  ;;  %v906_v11 = vadd.f32 %v905_v60, %v384_v9 }
 0x159   : > { %v907_v61 = vpop.f32.mrf.mxu0 }
 0x15a   : > { %v948_v0 = vpop.f32.mrf.mxu1  ;;  %v908_v12 = vadd.f32 %v907_v61, %v388_v10  ;;  %v947_v13 = vadd.f32 %v946_v62, %v906_v11 }
 0x15b   : > { %v909_v63 = vpop.f32.mrf.mxu0 }
 0x15c   : > { %v950_v2 = vpop.f32.mrf.mxu1  ;;  %v949_v15 = vadd.f32 %v948_v0, %v908_v12 }
 0x15d   : > { %v910_v1 = vpop.f32.mrf.mxu0 }
 0x15e   : > { %v951_v3 = vpop.f32.mrf.mxu1 }
 0x197   : > { %v987_v14 = vpop.f32.mrf.mxu0 }
 0x198   : > { %v988_v16 = vadd.f32 %v987_v14, %v947_v13 }
 0x199   : > { %v989_v17 = vpop.f32.mrf.mxu0 }
 0x19a   : > { %v990_v18 = vadd.f32 %v989_v17, %v949_v15  ;;  %v994_v19 = vmax.f32 %v988_v16, 0.0 }
 0x19b   : > { %v991_v20 = vpop.f32.mrf.mxu0 }
 0x19c   : > { %v995_v21 = vmax.f32 %v990_v18, 0.0  ;;  %v996_v24 = vpack.c.bf16 %v994_v19, %v994_v19 }
 0x19d   : > { %v992_v22 = vpop.f32.mrf.mxu0 }
 0x19e   : > { %v997_v23 = vpack.c.bf16 %v995_v21, %v995_v21 }
 0x1a0   : > { %1165 = vmatprep.mubr.bf16.mxu1 %v997_v23 }
 0x1a1   : > { %1166 = vmatmul.mubr.bf16.vlgmr.msra.gmra.mxu1 %v996_v24 }
 0x261   : > { %v1452_v25 = vpop.f32.mrf.mxu1 }
 0x263   : > { %v1453_v27 = vpop.f32.mrf.mxu1 }
 0x264   : > { %v1454_v28 = vadd.f32 %v1453_v27, %v1452_v25 }
 0x265   : > { %v1455_v29 = vpop.f32.mrf.mxu1 }
 0x266   : > { %v1168_v30 = vadd.f32 %v1454_v28, %v1415_v26 }
 0x267   : > { %v1456_v31 = vpop.f32.mrf.mxu1 }
 0x268   : > { %1173 = vmax.xlane.f32.xlu0 %v1168_v30 }
 0x2f1   : > { %v1174_v33 = vpop.xlane.xlu0 %1173 }
 0x2f2   : > { %v1175_v34 = vsub.f32 %v1168_v30, %v1174_v33  ;;  %vm1184_vm0 = vcmp.ge.f32.partialorder %v1168_v30, %v1174_v33 }
 0x2f3   : > { %v1185_v35 = vsel %vm1184_vm0, %v1183_v32, 128 }
 0x2f4   : > { %v1176_v36 = vmul.f32 1.442695, %v1175_v34  ;;  %v1187_v37 = vshra.s32 %v1185_v35, 16  ;;  %v1186_v40 = vand.u32 65535, %v1185_v35 }
 0x2f6   : > { %1692 = vpow2.f32 %v1176_v36  ;;  %v1189_v38 = vcvt.s32.f32 %v1187_v37  ;;  %v1188_v42 = vcvt.s32.f32 %v1186_v40 }
 0x2f8   : > { %1190 = vmin.xlane.f32.xlu0 %v1189_v38 }
 0x303   : > { %v1693_v39 = vpop.eup %1692 }
 0x304   : > { %1178 = vadd.xlane.f32.xlu1 %v1693_v39 }
 0x381   : > { %v1191_v41 = vpop.xlane.xlu0 %1190 }
 0x382   : > { %vm1192_vm1 = vcmp.eq.f32.partialorder %v1189_v38, %v1191_v41  ;;  %v1197_v45 = vcvt.f32.s32 %v1191_v41 }
 0x383   : > { %v1193_v43 = vsel %vm1192_vm1, %v1188_v42, inf }
 0x384   : > { %1194 = vmin.xlane.f32.xlu1 %v1193_v43  ;;  %v1198_v48 = vshll.u32 %v1197_v45, 16 }
 0x38d   : > { %v1179_v44 = vpop.xlane.xlu1 %1178 }
 0x38e   : > { %1694 = vrcp.f32 %v1179_v44 }
 0x39b   : > { %v1695_v46 = vpop.eup %1694 }
 0x39c   : > { %v1181_v50 = vmul.f32 %v1695_v46, %v1693_v39 }
 0x39e   : > { %v1202_v53 = vsel %vm1201_vm2, %v1695_v46, %v1181_v50 }
 0x40d   : > { %v1195_v47 = vpop.xlane.xlu1 %1194 }
 0x40e   : > { %v1196_v49 = vcvt.f32.s32 %v1195_v47 }
 0x410   : > { %v1199_v51 = vadd.s32 %v1198_v48, %v1196_v49 }
 0x412   : > { %v1200_v52 = vcvt.s32.f32 %v1199_v51 }
 0x414   : > { %v1204_v54 = vsel %vm1203_vm3, %v1200_v52, %v1202_v53 }
 0x415   : > { %1205 = vst [vmem:[%s269_s9] sm:$0xff] %v1204_v54 }
 0x416   : > { %1789 = shalt.err (!%p1786_p9)
}
 0x417   : > { %s1790_s24 = scalar_lea.hbm %s2033_s10, 128  ;;  %s1794_s8 = scalar_lea.hbm %s2075_s5, 256 }
 0x418   : > { %p1791_p13 = scmp.ne.s32.totalorder %s2033_s10, %s1790_s24  ;;  %p1795_p0 = scmp.lt.s32.totalorder %s2033_s10, %s2075_s5 }
 0x419   : > { %p1796_p4 = scmp.lt.s32.totalorder %s1794_s8, %s1790_s24 }
 0x41a   : > { %p1792_p5 = pnand %p1791_p13, %p2091_p11 }
 0x41b   : > { %p1797_p8 = por %p1796_p4, %p1795_p0 }
 0x41c   : > { %p1793_p10 = pneg %p1792_p5 }
 0x41e   : > { %p1798_p7 = pnand %p1797_p8, %p1793_p10 }
 0x420   : > { %1801 = shalt.err (!%p1798_p7)
}
 0x421   : > { %1471 = dma.vmem_to_hbm [thread:$0]  (%p2091_p11), %s1221_s6, 128, %s2033_s10, %s1207_s12  }
 0x422 PF: > { %s1232_s14 = sand.u32 1, %s1832_s18   ;;  %p2092_p1 = scmp.ne.s32.totalorder %s2081_s25, 0 }
 0x423   : > { %p2093_p2 = scmp.ge.s32.totalorder %s1844_s21, 2  ;;  %s1233_s9 = scalar_lea.sflag [#allocation4], %s1232_s14 }
 0x425   : > { %p1485_p6 = pnand %p2093_p2, %p2092_p1 }
 0x427   : > { %p1486_p12 = pneg %p1485_p6 }
 0x429   : > { %1827 = dma.done.wait (%p1486_p12), %s1233_s9, 128  }
 0x42a   : > { %1829 = vsyncadd (%p1486_p12), %s1233_s9, 4294967168  ;;  %p19_p3 = scmp.ge.s32.totalorder %s1956_s17, 4   ;;  %s2094_s18 = smov %s1836_s19 }
 0x42b   : > { %s2095_s19 = smov %s1840_s20  ;;  %s2096_s20 = smov %s1965_s28 }
 0x42c   : > { %s2097_s21 = smov %s1956_s17  ;;  %21 = sbr.rel (!%p19_p3) target bundleno = 6 (0x6), region = 93 }
 0x431   :  { %1238 = vsyncpa [#allocation3], 1 }
 0x432   :  { %1240 = vsyncpa [#allocation3 + $0x1], 1 }
 0x433   :  { %1241 = vsyncpa [#allocation6], 1 }
 0x434   :  { %1242 = vsyncpa [#allocation4], 1 }
 0x435   :  { %1244 = vsyncpa [#allocation4 + $0x1], 1 }

</bundles_post_ra>
